<compile_context>
chip_gen: v7x
topology: tpu7x:2x2x1
jax: 0.10.0
libtpu: 0.0.40
codegen_flags: <defaults>
</compile_context>

<pallas_src>
import functools

import numpy as np

import jax
import jax.numpy as jnp
from jax import lax
from jax.experimental import pallas as pl
from jax.experimental.pallas import tpu as pltpu


# ----------------------------------------------------------------------------
# Glue: torchvision-compatible output-size computation + weight matrices (f32)
# ----------------------------------------------------------------------------
def _torchvision_output_size(h, w, size, max_size):
    """Replicates torchvision.transforms.functional.resize size logic (int size)."""
    short, long = (h, w) if h <= w else (w, h)
    new_short = size
    new_long = int(size * long / short)
    if max_size is not None and new_long > max_size:
        new_long = max_size
        new_short = int(max_size * short / long)
    if h <= w:
        return new_short, new_long
    return new_long, new_short


def _bilinear_weights(in_size, out_size):
    """(out_size, in_size) f32 bilinear weights; align_corners=False, no antialias."""
    scale = in_size / out_size
    dst = jnp.arange(out_size, dtype=jnp.float32)
    src = (dst + 0.5) * scale - 0.5
    src = jnp.maximum(src, 0.0)                      # PyTorch clamps negatives to 0
    i0 = jnp.clip(jnp.floor(src).astype(jnp.int32), 0, in_size - 1)
    i1 = jnp.clip(i0 + 1, 0, in_size - 1)
    lam = jnp.clip(src - i0.astype(jnp.float32), 0.0, 1.0)
    cols = jnp.arange(in_size)
    w0 = (1.0 - lam)[:, None] * (cols[None, :] == i0[:, None]).astype(jnp.float32)
    w1 = lam[:, None] * (cols[None, :] == i1[:, None]).astype(jnp.float32)
    return w0 + w1


def _nearest_weights(in_size, out_size):
    """(out_size, in_size) f32 one-hot selection matrix; legacy 'nearest' (floor)."""
    scale = in_size / out_size
    idx = jnp.floor(jnp.arange(out_size, dtype=jnp.float32) * scale).astype(jnp.int32)
    idx = jnp.clip(idx, 0, in_size - 1)
    cols = jnp.arange(in_size)
    return (cols[None, :] == idx[:, None]).astype(jnp.float32)


# ----------------------------------------------------------------------------
# Band plan: per output-row-tile input band (offset, length) covering all taps
# ----------------------------------------------------------------------------
def _band_plan(in_size, out_size, t, align, mode):
    """Returns (offs[int32, n_tiles], k_band, n_tiles) for the H (first) pass."""
    n_tiles = -(-out_size // t)
    scale = in_size / out_size
    los, his = [], []
    for ti in range(n_tiles):
        o0 = ti * t
        o1 = min((ti + 1) * t, out_size) - 1
        if mode == "nearest":
            lo = int(np.floor(o0 * scale))
            hi = int(np.floor(o1 * scale))
        else:  # bilinear, 2-tap: i0 = floor((o+0.5)*scale-0.5), i1 = i0+1
            lo = int(np.floor(max((o0 + 0.5) * scale - 0.5, 0.0)))
            hi = int(np.floor(max((o1 + 0.5) * scale - 0.5, 0.0))) + 1
        lo = min(max(lo, 0), in_size - 1)
        hi = min(max(hi, lo), in_size - 1)
        los.append(lo)
        his.append(hi)
    offs = [(lo // align) * align for lo in los]
    span = max(h - o + 1 for h, o in zip(his, offs))
    k_band = min(-(-span // align) * align, in_size)
    # keep (in_size - k_band) aligned so every clamped offset stays a multiple of align
    k_band = in_size - ((in_size - k_band) // align) * align
    offs = [max(0, min(o, in_size - k_band)) for o in offs]
    return np.asarray(offs, np.int32), int(k_band), n_tiles


# ----------------------------------------------------------------------------
# Pallas kernel: separable resize on a block of Bc channel slices
# ----------------------------------------------------------------------------
def _resize_kernel(offs_ref, w1_ref, w2_ref, x_ref, o_ref, tmp_ref, *,
                   h_first, bc, k_band, t, h_in, align):
    if h_first:
        # w1 : (t, k_band)   banded H weights for this output-row tile
        # w2 : (W_in, W_out) full (already transposed)
        # x  : (bc, H_in, W_in) resident across tiles
        # o  : (bc, t, W_out)
        # tmp: (bc*t, W_in)  scratch in compute dtype
        w1 = w1_ref[...]
        if k_band == h_in:
            band = lambda b: x_ref[b]                       # dense fallback
        else:
            off = pl.multiple_of(offs_ref[pl.program_id(1)], align)
            band = lambda b: x_ref[b, pl.ds(off, k_band), :]
        for b in range(bc):                                 # sublane-contraction matmuls
            tb = jnp.dot(w1, band(b), preferred_element_type=jnp.float32)
            tmp_ref[pl.ds(b * t, t), :] = tb.astype(tmp_ref.dtype)
        # batched lane-contraction matmul across all channels in the block
        out = jnp.dot(tmp_ref[...], w2_ref[...], preferred_element_type=jnp.float32)
        o_ref[...] = out.reshape(o_ref.shape).astype(o_ref.dtype)
    else:
        # w1 : (H_out, H_in) full ; w2: (W_in, t) column tile
        # x  : (bc, H_in, W_in) ; o: (bc, H_out, t) ; tmp: (bc*H_in, t)
        xall = x_ref[...].reshape(bc * h_in, x_ref.shape[-1])
        tmp_ref[...] = jnp.dot(xall, w2_ref[...],
                               preferred_element_type=jnp.float32).astype(tmp_ref.dtype)
        w1 = w1_ref[...]
        for b in range(bc):
            ob = jnp.dot(w1, tmp_ref[pl.ds(b * h_in, h_in), :],
                         preferred_element_type=jnp.float32)
            o_ref[b] = ob.astype(o_ref.dtype)


# ----------------------------------------------------------------------------
# Generation-aware VMEM budget
# ----------------------------------------------------------------------------
@functools.lru_cache(maxsize=1)
def _vmem_budget_and_cap():
    try:
        cap = int(pltpu.get_tpu_info().vmem_capacity_bytes)
    except Exception:
        cap = 64 << 20                       # conservative fallback (v7x-sized)
    if cap >= (96 << 20):                    # v5e / v6e: 128 MiB VMEM
        return int(cap * 0.70), int(cap * 0.82)      # ~90 MiB budget, ~105 MiB limit
    return int(cap * 0.58), int(cap * 0.76)          # v7x 64 MiB: ~37 / ~49 MiB


_BC_CAP = 16          # channel slices per grid step (upper bound)
_T_CAP = 256          # first-pass output-row tile cap (bounds the K band)


# ----------------------------------------------------------------------------
# Cached builder: one compiled pallas_call per static (shape, dtype, mode)
# ----------------------------------------------------------------------------
@functools.lru_cache(maxsize=128)
def _get_resize(B, H_in, W_in, H_out, W_out, io_dtype, compute_dtype, mode,
                tile_override=None, order_override=None):
    io_dt = jnp.dtype(io_dtype)
    cdt = jnp.dtype(compute_dtype)
    csize = cdt.itemsize
    osize = io_dt.itemsize
    budget, vmem_cap = _vmem_budget_and_cap()
    align_h = 16 if csize <= 2 else 8        # sublane packing of x in compute dtype

    # ---- matmul-order choice (h_first gets the banded K, and writes full
    #      lane-width W_out rows -> bias toward it unless w_first is clearly cheaper)
    t_est = max(align_h, min(H_out, _T_CAP))
    k_est = min(H_in, int(np.ceil(t_est * H_in / H_out)) + 2 * align_h)
    cost_h_first = H_out * W_in * k_est + H_out * W_in * W_out
    cost_w_first = H_in * W_in * W_out + H_in * H_out * W_out
    h_first = not (cost_w_first < 0.8 * cost_h_first)
    if order_override is not None:
        h_first = bool(order_override)

    full_t = H_out if h_first else W_out
    t_align = align_h if h_first else 128

    def band(t):
        if h_first:
            return _band_plan(H_in, H_out, t, align_h, mode)
        return np.zeros((1,), np.int32), W_in, -(-W_out // t)

    def ws_bytes(bc, t, k_band):
        x_blk = bc * H_in * W_in * csize
        if h_first:
            out_blk = bc * t * W_out * osize
            w1_blk = t * k_band * csize
            w2_blk = W_in * W_out * csize
            interm = bc * t * W_in * csize
        else:
            out_blk = bc * H_out * t * osize
            w1_blk = H_out * H_in * csize
            w2_blk = W_in * t * csize
            interm = bc * H_in * t * csize
        # x2: double-buffered pipelining on every pallas-managed block; scratch once
        return 2 * (x_blk + out_blk + w1_blk + w2_blk) + interm

    # initial spatial tile: cap the first-pass output tile so the K band stays small
    if tile_override is not None:
        t = int(tile_override)
    elif h_first:
        t = min(full_t, _T_CAP)
        if t < full_t:
            t = max(t_align, (t // t_align) * t_align)
    else:
        t = full_t
    t = min(t, full_t)

    bc = min(B, _BC_CAP)

    def shrink(bc, t):
        offs, k_band, n_tiles = band(t)
        while bc > 1 and ws_bytes(bc, t, k_band) > budget:
            bc = max(1, bc // 2)
        while t > t_align and ws_bytes(bc, t, k_band) > budget:
            t = max(t_align, ((t // 2 + t_align - 1) // t_align) * t_align)
            offs, k_band, n_tiles = band(t)
        return bc, t, offs, k_band, n_tiles

    bc, t, offs, k_band, n_tiles = shrink(bc, t)

    # keep both megacore TensorCores busy: prefer splitting the spatial tile over
    # growing the channel block, and always re-validate the VMEM budget afterwards.
    if pl.cdiv(B, bc) * n_tiles < 2:
        if tile_override is None and full_t >= 2 * t_align:
            t = max(t_align, ((full_t // 2 + t_align - 1) // t_align) * t_align)
        elif B > 1:
            bc = (B + 1) // 2
        bc, t, offs, k_band, n_tiles = shrink(bc, t)

    ws = ws_bytes(bc, t, k_band)
    vmem_limit = int(min(max(int(ws * 1.4) + (2 << 20), 32 << 20), vmem_cap))

    offs_tuple = tuple(int(o) for o in offs)

    if h_first:
        grid = (pl.cdiv(B, bc), n_tiles)
        in_specs = [
            pl.BlockSpec((t, k_band), lambda bi, ti, ofr: (ti, 0)),       # banded W_h
            pl.BlockSpec((W_in, W_out), lambda bi, ti, ofr: (0, 0)),      # W_w^T (full)
            pl.BlockSpec((bc, H_in, W_in), lambda bi, ti, ofr: (bi, 0, 0)),  # x resident over ti
        ]
        out_specs = pl.BlockSpec((bc, t, W_out), lambda bi, ti, ofr: (bi, ti, 0))
        scratch = [pltpu.VMEM((bc * t, W_in), cdt)]
    else:
        grid = (pl.cdiv(B, bc), n_tiles)
        in_specs = [
            pl.BlockSpec((H_out, H_in), lambda bi, ti, ofr: (0, 0)),      # W_h (full)
            pl.BlockSpec((W_in, t), lambda bi, ti, ofr: (0, ti)),         # W_w^T tile
            pl.BlockSpec((bc, H_in, W_in), lambda bi, ti, ofr: (bi, 0, 0)),
        ]
        out_specs = pl.BlockSpec((bc, H_out, t), lambda bi, ti, ofr: (bi, 0, ti))
        scratch = [pltpu.VMEM((bc * H_in, t), cdt)]

    grid_spec = pltpu.PrefetchScalarGridSpec(
        num_scalar_prefetch=1,
        grid=grid,
        in_specs=in_specs,
        out_specs=out_specs,
        scratch_shapes=scratch,
    )

    kernel = functools.partial(_resize_kernel, h_first=h_first, bc=bc,
                               k_band=k_band, t=t, h_in=H_in, align=align_h)

    call = pl.pallas_call(
        kernel,
        out_shape=jax.ShapeDtypeStruct((B, H_out, W_out), io_dt),
        grid_spec=grid_spec,
        compiler_params=pltpu.CompilerParams(
            dimension_semantics=("parallel", "parallel"),
            vmem_limit_bytes=vmem_limit),
    )

    def run(x_bhw):
        if mode == "bilinear":
            w_h = _bilinear_weights(H_in, H_out)
            w_w = _bilinear_weights(W_in, W_out)
        else:  # nearest (one-hot weights: exact in bf16)
            w_h = _nearest_weights(H_in, H_out)
            w_w = _nearest_weights(W_in, W_out)
        w2 = w_w.T.astype(cdt)                                   # (W_in, W_out)
        if h_first:
            pad = n_tiles * t - H_out
            w_h_p = jnp.pad(w_h, ((0, pad), (0, 0)))
            # banded per-tile weight slabs (static offsets, constant-folded under jit)
            w1 = jnp.concatenate(
                [lax.slice(w_h_p, (ti * t, offs_tuple[ti]),
                           (ti * t + t, offs_tuple[ti] + k_band))
                 for ti in range(n_tiles)], axis=0).astype(cdt)  # (n_tiles*t, k_band)
        else:
            w1 = w_h.astype(cdt)                                 # (H_out, H_in)
        offs_arr = jnp.asarray(offs_tuple, dtype=jnp.int32)
        return call(offs_arr, w1, w2, x_bhw.astype(cdt))

    return jax.jit(run)


# ----------------------------------------------------------------------------
# dResize module equivalent
# ----------------------------------------------------------------------------
class DResize:
    def __init__(self, size, max_size=2000, size_bucket=None, seed=0):
        """size: (min, max) shorter-edge interval; max_size: longest-edge clamp.

        size_bucket (optional int): round the random target size to this multiple
        to bound the number of distinct output shapes / Mosaic compiles.
        seed: host-side RNG seed (the random size draw never syncs the device).
        """
        self.size = size
        self.max_size = max_size
        self.size_bucket = size_bucket
        self.name = "dResize"
        self._rng = np.random.default_rng(seed)

    def __call__(self, x, mask):
        """x: (N, C, H, W); mask: (N, Cm, H, W). Returns (x_out, mask_out)."""
        if x is None:
            # matches the PyTorch module: mask is only resized when x is not None
            return None, None

        # random target shorter-edge size, drawn on the HOST (static output shapes
        # are mandatory for JAX/Pallas, so this cannot live on-device anyway).
        target = int(self._rng.integers(self.size[0], self.size[1]))
        if self.size_bucket is not None and self.size_bucket > 1:
            b = int(self.size_bucket)
            target = int(round(target / b) * b)
            target = max(self.size[0], min(target, self.size[1] - 1))

        N, C, H, W = x.shape
        H_out, W_out = _torchvision_output_size(H, W, target, self.max_size)

        fn_img = _get_resize(N * C, H, W, H_out, W_out,
                             str(jnp.dtype(x.dtype)), "bfloat16", "bilinear")
        x_out = fn_img(x.reshape(N * C, H, W)).reshape(N, C, H_out, W_out)

        mask_out = None
        if mask is not None:
            Nm, Cm, Hm, Wm = mask.shape
            assert (Hm, Wm) == (H, W), "dResize: mask must match image H,W"
            m_io = jnp.float32 if mask.dtype == jnp.bool_ else mask.dtype
            # bf16 compute: one-hot weights and {0,1} masks are exact in bf16,
            # and it avoids the f32 MXU multi-pass (v7x has no int MXU path).
            fn_m = _get_resize(Nm * Cm, Hm, Wm, H_out, W_out,
                               str(jnp.dtype(m_io)), "bfloat16", "nearest")
            m_in = mask.astype(m_io).reshape(Nm * Cm, Hm, Wm)
            mask_out = fn_m(m_in).reshape(Nm, Cm, H_out, W_out)
            if mask.dtype == jnp.bool_:
                mask_out = mask_out > 0.5

        return x_out, mask_out

    def __repr__(self):
        return self.name + "(" + str(self.size) + ")"


if __name__ == "__main__":
    key = jax.random.PRNGKey(0)
    k_x, k_m = jax.random.split(key)

    # small NCHW inputs (non-square to exercise aspect-ratio handling)
    x = jax.random.normal(k_x, (2, 4, 16, 24), dtype=jnp.float32)
    mask = (jax.random.uniform(k_m, (2, 1, 16, 24)) > 0.5).astype(jnp.float32)

    op = DResize(size=(12, 24), max_size=2000, seed=0)
    x_out, mask_out = op(x, mask)
    jax.block_until_ready(x_out)
    jax.block_until_ready(mask_out)

    # reference for the same (host-RNG) random target
    target = int(np.random.default_rng(0).integers(12, 24))
    H_out, W_out = _torchvision_output_size(16, 24, target, 2000)
    wh = _bilinear_weights(16, H_out)
    ww = _bilinear_weights(24, W_out)
    ref = jnp.einsum("oh,nchw,pw->ncop", wh, x, ww)

    assert x_out.shape == (2, 4, H_out, W_out)
    assert mask_out.shape == (2, 1, H_out, W_out)
    # bf16 compute with f32 accumulation -> loose tolerance vs f32 reference
    assert jnp.allclose(x_out, ref, atol=5e-2, rtol=5e-2)

    # mask path: nearest is an exact selection, values stay exactly 0/1
    whn = _nearest_weights(16, H_out)
    wwn = _nearest_weights(24, W_out)
    ref_m = jnp.einsum("oh,nchw,pw->ncop", whn, mask, wwn)
    assert bool(jnp.all((mask_out == 0.0) | (mask_out == 1.0)))
    assert jnp.allclose(mask_out, ref_m)

    # multi-tile banded H pass (h_first forced, small tile -> k_band < H_in)
    xb = jax.random.normal(jax.random.PRNGKey(1), (8, 64, 40), dtype=jnp.float32)
    fn_band = _get_resize(8, 64, 40, 48, 56, "float32", "bfloat16", "bilinear",
                          tile_override=16, order_override=True)
    yb = fn_band(xb)
    jax.block_until_ready(yb)
    ref_b = jnp.einsum("oh,bhw,pw->bop",
                       _bilinear_weights(64, 48), xb, _bilinear_weights(40, 56))
    assert yb.shape == (8, 48, 56)
    assert jnp.allclose(yb, ref_b, atol=5e-2, rtol=5e-2)

    # w_first (width-pass-first) order, batched lane-contraction matmul
    fn_w = _get_resize(8, 16, 24, 20, 30, "float32", "bfloat16", "bilinear",
                       order_override=False)
    yw = fn_w(x.reshape(8, 16, 24))
    jax.block_until_ready(yw)
    ref_w = jnp.einsum("oh,bhw,pw->bop",
                       _bilinear_weights(16, 20), x.reshape(8, 16, 24),
                       _bilinear_weights(24, 30))
    assert yw.shape == (8, 20, 30)
    assert jnp.allclose(yw, ref_w, atol=5e-2, rtol=5e-2)

    print("KERNEL_OK")
</pallas_src>

<mosaic_0001>
module attributes {stable_mosaic.version = 11 : i64} {
  func.func @_resize_kernel(%arg0: i32, %arg1: i32, %arg2: memref<1xi32, #tpu.memory_space<smem>>, %arg3: memref<22x16xbf16, #tpu.memory_space<vmem>>, %arg4: memref<24x33xbf16, #tpu.memory_space<vmem>>, %arg5: memref<4x16x24xbf16, #tpu.memory_space<vmem>>, %arg6: memref<4x22x33xf32, #tpu.memory_space<vmem>>, %arg7: memref<88x24xbf16, #tpu.memory_space<vmem>>) attributes {dimension_semantics = [#tpu.dimension_semantics<parallel>, #tpu.dimension_semantics<parallel>], iteration_bounds = array<i64: 2, 1>, scalar_prefetch = 1 : i64, scratch_operands = 1 : i64, tpu.core_type = #tpu.core_type<tc>, window_params = [{transform_indices = @transform_0, window_bounds = array<i64: 22, 16>}, {pipeline_mode = #tpu.pipeline_mode<synchronous>, transform_indices = @transform_1, window_bounds = array<i64: 24, 33>}, {transform_indices = @transform_2, window_bounds = array<i64: 4, 16, 24>}, {transform_indices = @transform_3, window_bounds = array<i64: 4, 22, 33>}]} {
    %c0 = arith.constant 0 : index
    %c0_0 = arith.constant 0 : index
    %0 = vector.load %arg3[%c0, %c0_0] : memref<22x16xbf16, #tpu.memory_space<vmem>>, vector<22x16xbf16>
    %c0_1 = arith.constant 0 : index
    %c0_2 = arith.constant 0 : index
    %c0_3 = arith.constant 0 : index
    %1 = vector.load %arg5[%c0_1, %c0_2, %c0_3] : memref<4x16x24xbf16, #tpu.memory_space<vmem>>, vector<1x16x24xbf16>
    %2 = vector.shape_cast %1 : vector<1x16x24xbf16> to vector<16x24xbf16>
    %cst = arith.constant dense<0.000000e+00> : vector<22x24xf32>
    %3 = tpu.matmul %0, %2, %cst {dimension_numbers = #tpu.dot_dimension_numbers<[1], [0], [0], [1], [0, 0, 1, 1], [], []>} : vector<22x16xbf16>, vector<16x24xbf16>, vector<22x24xf32> -> vector<22x24xf32>
    %4 = arith.truncf %3 : vector<22x24xf32> to vector<22x24xbf16>
    %c0_4 = arith.constant 0 : index
    %c0_5 = arith.constant 0 : index
    %5 = vector.load %arg7[%c0_4, %c0_5] : memref<88x24xbf16, #tpu.memory_space<vmem>>, vector<22x24xbf16>
    tpu.vector_store %arg7[%c0_4, %c0_5], %4 {strides = array<i32>} : memref<88x24xbf16, #tpu.memory_space<vmem>>, vector<22x24xbf16>,
    %c1 = arith.constant 1 : index
    %c0_6 = arith.constant 0 : index
    %c0_7 = arith.constant 0 : index
    %6 = vector.load %arg5[%c1, %c0_6, %c0_7] : memref<4x16x24xbf16, #tpu.memory_space<vmem>>, vector<1x16x24xbf16>
    %7 = vector.shape_cast %6 : vector<1x16x24xbf16> to vector<16x24xbf16>
    %cst_8 = arith.constant dense<0.000000e+00> : vector<22x24xf32>
    %8 = tpu.matmul %0, %7, %cst_8 {dimension_numbers = #tpu.dot_dimension_numbers<[1], [0], [0], [1], [0, 0, 1, 1], [], []>} : vector<22x16xbf16>, vector<16x24xbf16>, vector<22x24xf32> -> vector<22x24xf32>
    %9 = arith.truncf %8 : vector<22x24xf32> to vector<22x24xbf16>
    %c22 = arith.constant 22 : index
    %c0_9 = arith.constant 0 : index
    %10 = vector.load %arg7[%c22, %c0_9] : memref<88x24xbf16, #tpu.memory_space<vmem>>, vector<22x24xbf16>
    tpu.vector_store %arg7[%c22, %c0_9], %9 {strides = array<i32>} : memref<88x24xbf16, #tpu.memory_space<vmem>>, vector<22x24xbf16>,
    %c2 = arith.constant 2 : index
    %c0_10 = arith.constant 0 : index
    %c0_11 = arith.constant 0 : index
    %11 = vector.load %arg5[%c2, %c0_10, %c0_11] : memref<4x16x24xbf16, #tpu.memory_space<vmem>>, vector<1x16x24xbf16>
    %12 = vector.shape_cast %11 : vector<1x16x24xbf16> to vector<16x24xbf16>
    %cst_12 = arith.constant dense<0.000000e+00> : vector<22x24xf32>
    %13 = tpu.matmul %0, %12, %cst_12 {dimension_numbers = #tpu.dot_dimension_numbers<[1], [0], [0], [1], [0, 0, 1, 1], [], []>} : vector<22x16xbf16>, vector<16x24xbf16>, vector<22x24xf32> -> vector<22x24xf32>
    %14 = arith.truncf %13 : vector<22x24xf32> to vector<22x24xbf16>
    %c44 = arith.constant 44 : index
    %c0_13 = arith.constant 0 : index
    %15 = vector.load %arg7[%c44, %c0_13] : memref<88x24xbf16, #tpu.memory_space<vmem>>, vector<22x24xbf16>
    tpu.vector_store %arg7[%c44, %c0_13], %14 {strides = array<i32>} : memref<88x24xbf16, #tpu.memory_space<vmem>>, vector<22x24xbf16>,
    %c3 = arith.constant 3 : index
    %c0_14 = arith.constant 0 : index
    %c0_15 = arith.constant 0 : index
    %16 = vector.load %arg5[%c3, %c0_14, %c0_15] : memref<4x16x24xbf16, #tpu.memory_space<vmem>>, vector<1x16x24xbf16>
    %17 = vector.shape_cast %16 : vector<1x16x24xbf16> to vector<16x24xbf16>
    %cst_16 = arith.constant dense<0.000000e+00> : vector<22x24xf32>
    %18 = tpu.matmul %0, %17, %cst_16 {dimension_numbers = #tpu.dot_dimension_numbers<[1], [0], [0], [1], [0, 0, 1, 1], [], []>} : vector<22x16xbf16>, vector<16x24xbf16>, vector<22x24xf32> -> vector<22x24xf32>
    %19 = arith.truncf %18 : vector<22x24xf32> to vector<22x24xbf16>
    %c66 = arith.constant 66 : index
    %c0_17 = arith.constant 0 : index
    %20 = vector.load %arg7[%c66, %c0_17] : memref<88x24xbf16, #tpu.memory_space<vmem>>, vector<22x24xbf16>
    tpu.vector_store %arg7[%c66, %c0_17], %19 {strides = array<i32>} : memref<88x24xbf16, #tpu.memory_space<vmem>>, vector<22x24xbf16>,
    %c0_18 = arith.constant 0 : index
    %c0_19 = arith.constant 0 : index
    %21 = vector.load %arg7[%c0_18, %c0_19] : memref<88x24xbf16, #tpu.memory_space<vmem>>, vector<88x24xbf16>
    %c0_20 = arith.constant 0 : index
    %c0_21 = arith.constant 0 : index
    %22 = vector.load %arg4[%c0_20, %c0_21] : memref<24x33xbf16, #tpu.memory_space<vmem>>, vector<24x33xbf16>
    %cst_22 = arith.constant dense<0.000000e+00> : vector<88x33xf32>
    %23 = tpu.matmul %21, %22, %cst_22 {dimension_numbers = #tpu.dot_dimension_numbers<[1], [0], [0], [1], [0, 0, 1, 1], [], []>} : vector<88x24xbf16>, vector<24x33xbf16>, vector<88x33xf32> -> vector<88x33xf32>
    %24 = vector.shape_cast %23 : vector<88x33xf32> to vector<4x22x33xf32>
    %c0_23 = arith.constant 0 : index
    %c0_24 = arith.constant 0 : index
    %c0_25 = arith.constant 0 : index
    %25 = vector.load %arg6[%c0_23, %c0_24, %c0_25] : memref<4x22x33xf32, #tpu.memory_space<vmem>>, vector<4x22x33xf32>
    tpu.vector_store %arg6[%c0_23, %c0_24, %c0_25], %24 {strides = array<i32>} : memref<4x22x33xf32, #tpu.memory_space<vmem>>, vector<4x22x33xf32>,
    return
  }
  func.func @transform_0(%arg0: i32, %arg1: i32, %arg2: memref<1xi32, #tpu.memory_space<smem>>) -> (i32, i32) {
    %c0_i32 = arith.constant 0 : i32
    %c0_i32_0 = arith.constant 0 : i32
    return %arg1, %c0_i32 : i32, i32
  }
  func.func @transform_1(%arg0: i32, %arg1: i32, %arg2: memref<1xi32, #tpu.memory_space<smem>>) -> (i32, i32) {
    %c0_i32 = arith.constant 0 : i32
    %c0_i32_0 = arith.constant 0 : i32
    %c0_i32_1 = arith.constant 0 : i32
    return %c0_i32, %c0_i32_0 : i32, i32
  }
  func.func @transform_2(%arg0: i32, %arg1: i32, %arg2: memref<1xi32, #tpu.memory_space<smem>>) -> (i32, i32, i32) {
    %c0_i32 = arith.constant 0 : i32
    %c0_i32_0 = arith.constant 0 : i32
    %c0_i32_1 = arith.constant 0 : i32
    return %arg0, %c0_i32, %c0_i32_0 : i32, i32, i32
  }
  func.func @transform_3(%arg0: i32, %arg1: i32, %arg2: memref<1xi32, #tpu.memory_space<smem>>) -> (i32, i32, i32) {
    %c0_i32 = arith.constant 0 : i32
    %c0_i32_0 = arith.constant 0 : i32
    return %arg0, %arg1, %c0_i32 : i32, i32, i32
  }
}

</mosaic_0001>

<bundles_post_ra>
// kernel: run.1
= control target key start
LH: loop header
LB: loop body
LE: loop exit
PB: predicated region body
PF: predicated region fallthrough
CT: control target
= control target key end

     0   :  { %s1479_s15 = smov 0   ;;  %s1481_s16 = smov 0   ;;  %s1633_s0 = inlined_call_operand.<no memory space> [shape: s32[1], index: 0, kind: input, shape index: {}]   ;;  %s1634_s1 = inlined_call_operand.vmem [shape: bf16[22,16], index: 1, kind: input, shape index: {}]   ;;  %s1635_s2 = inlined_call_operand.vmem [shape: bf16[24,33], index: 2, kind: input, shape index: {}]   ;;  %s1636_s3 = inlined_call_operand.vmem [shape: bf16[8,16,24], index: 3, kind: input, shape index: {}]   ;;  %s1637_s4 = inlined_call_operand.vmem [shape: f32[8,22,33], index: 4, kind: output, shape index: {}]  }
   0x1   :  { %s1483_s17 = smov 0  }
   0x2 LB: > { %s27_s0 = sadd.s32 1, %s1447_s16  ;;  %p1261_p0 = scmp.ge.s32.totalorder %s1451_s17, 1  ;;  %s1451_s17 = sphi %s1483_s17, %s15_s17   ;;  %s1447_s16 = sphi %s1481_s16, %s1641_s16   ;;  %s1443_s15 = sphi %s1479_s15, %s1640_s15  }
   0x3   : > { %p29_p1 = scmp.ge.s32.totalorder %s27_s0, 2  ;;  %p166_p2 = scmp.lt.s32.totalorder %s1451_s17, 3 }
   0x5   : > { %s1643_s0 = smov (%p29_p1, %s27_s0), 0  ;;  %p167_p3 = pnand %p1261_p0, %p166_p2 }
   0x6   : > { %s1262_s18 = sshll.u32 (!%p167_p3), %s1443_s15, 2  ;;  %v1416_v0 = vld [vmem:[%s1634_s1] sm:$0xff] (!%p167_p3)   ;;  %vm246_vm0 = vcmask (!%p167_p3), 130048   ;;  %v1417_v2 = vld [vmem:[%s1634_s1 + $0x8] ss:$0 sps:$4 sm:$0x77] (!%p167_p3)  }
   0x7   : > { %170 = sbr.rel (%p167_p3) target bundleno = 507 (0x1fb), region = 32  ;;  %p208_p4 = scmp.lt.s32.totalorder (!%p167_p3), %s1262_s18, 7  ;;  %1350 = vmatprep.mubr.msk.bf16.mxu1 (!%p167_p3), %vm246_vm0, %v1416_v0  ;;  %1362 = vmatprep.mubr.msk.bf16.mxu0 (!%p167_p3), %vm246_vm0, %v1416_v0  ;;  %v1422_v6 = vld [vmem:[%s1635_s2] sm:$0xff] (!%p167_p3)   ;;  %v1423_v7 = vld [vmem:[%s1635_s2 + $0x8] ss:$0 sps:$4 sm:$0xff] (!%p167_p3)   ;;  %vm649_vm1 = vcmask (!%p167_p3), 1043456  }
   0x8   : > { %v651_v8 = vsel (!%p167_p3), %vm649_vm1, %v1423_v7, 0  ;;  %vm317_vm2 = vcmask (!%p167_p3), 190464   ;;  %vm314_vm3 = vcmask (!%p167_p3), 191488   ;;  %vm474_vm4 = vcmask (!%p167_p3), 1041408  }
   0x9   : > { %vm475_vm5 = vcmask (!%p167_p3), 1045508   ;;  %vm489_vm6 = vcmask (!%p167_p3), 191490   ;;  %vm493_vm7 = vcmask (!%p167_p3), 188416   ;;  %vm386_vm9 = vcmask (!%p167_p3), 1042432  }
   0xa   : > { %vm1525_vm8 = vmor (!%p167_p3), %vm474_vm4, %vm475_vm5  ;;  %vm387_vm10 = vcmask (!%p167_p3), 1046532   ;;  %vm405_vm11 = vcmask (!%p167_p3), 189440   ;;  %vm401_vm12 = vcmask (!%p167_p3), 191491   ;;  %vm630_vm13 = vcmask (!%p167_p3), 195584  }
   0xb   : > { %vm388_vm14 = vmor (!%p167_p3), %vm386_vm9, %vm387_vm10  ;;  %vm562_vm15 = vcmask (!%p167_p3), 1040384   ;;  %vm1143_vm4 = vcmask (!%p167_p3), 269312  }
   0xe   : > { %s1645_s18 = smov (!%p208_p4, %s1262_s18), 7 }
   0xf   : > { %s1315_s21 = sshll.u32 %s1645_s18, 3  ;;  %s1389_s5 = smul.u32 24, %s1645_s18 }
  0x10   : > { %s212_s24 = scalar_lea.vmem %s1636_s3, %s1315_s21 }
  0x11   : > { %v1415_v1 = vld [vmem:[%s212_s24] sm:$0xff]   ;;  %v1418_v3 = vld [vmem:[%s212_s24 + $0x8] sm:$0xff]   ;;  %v1419_v4 = vld [vmem:[%s212_s24 + $0x10] sm:$0xff]   ;;  %s1562_s8 = scalar_lea.vmem %s1637_s4, %s1389_s5 }
  0x12   : > { %1348 = vmatprep.subr.bf16.mxu1 %v1415_v1  ;;  %1360 = vmatprep.subr.bf16.mxu0 %v1419_v4  ;;  %v1420_v5 = vld [vmem:[%s212_s24 + $0x18] sm:$0xff]  }
  0x13   : > { %1349 = vmatpush3.bf16.msra.mxu1 %v1415_v1  ;;  %1361 = vmatpush3.bf16.msra.mxu0 %v1419_v4 }
  0x14   : > { %1354 = vmatprep.subr.bf16.mxu1 %v1418_v3  ;;  %1372 = vmatprep.subr.bf16.mxu0 %v1422_v6 }
  0x16   : > { %1351 = vmatmul.mubr.msk.bf16.vlgmr.msra.gmra.mrb[0].mxu1 %vm246_vm0, %v1417_v2  ;;  %1363 = vmatmul.mubr.msk.bf16.vlgmr.msra.gmra.mrb[0].mxu0 %vm246_vm0, %v1417_v2 }
  0x17   : > { %1355 = vmatpush3.bf16.msra.mxu1 %v1418_v3  ;;  %1356 = vmatprep.mubr.msk.bf16.mxu1 %vm246_vm0, %v1416_v0  ;;  %v1453_v3 = vmov 1983009808  }
  0x18   : > { %1366 = vmatprep.subr.bf16.mxu1 %v1420_v5  ;;  %1373 = vmatpush3.bf16.msra.mxu0 %v1422_v6  ;;  %v746_v4 = vunpack.c.l.s4 %v1453_v3 }
  0x19   : > { %1388 = vmatprep.subr.msk.bf16.mxu0 %vm649_vm1, %v1423_v7  ;;  %vm575_vm1 = vcmask 191489  }
  0x1a   : > { %v747_v6 = vunpack.c.0.s8 %v746_v4 }
  0x1c   : > { %1375 = vmatpush3.bf16.msra.mxu0 %v651_v8 }
  0x1e   : > { %1357 = vmatmul.mubr.msk.bf16.vlgmr.msra.gmra.mrb[4].mxu1 %vm246_vm0, %v1417_v2 }
  0x1f   : > { %1367 = vmatpush3.bf16.msra.mxu1 %v1420_v5  ;;  %1368 = vmatprep.mubr.msk.bf16.mxu1 %vm246_vm0, %v1416_v0  ;;  %v748_v5 = vlaneseq }
  0x21   : > { %v749_v7 = vshrl.u32 %v748_v5, 7 }
  0x23   : > { %v1546_v8 = vsub.s32 %v747_v6, %v749_v7 }
  0x26   : > { %1369 = vmatmul.mubr.msk.bf16.vlgmr.msra.gmra.mrb[8].mxu1 %vm246_vm0, %v1417_v2  ;;  %vm563_vm0 = vcmask 1044484  }
  0xe9   : > { %v1352_v9 = vpop.f32.mrb[0].mxu1  ;;  %v1364_v14 = vpop.f32.mrb[0].mxu0 }
  0xea   : > { %v1318_v10 = vpack.c.bf16 %v1352_v9, %v1352_v9  ;;  %v287_v11 = vpop.f32.mrb[1].mxu1  ;;  %v1324_v16 = vpack.c.bf16 %v1364_v14, %v1364_v14  ;;  %v450_v17 = vpop.f32.mrb[1].mxu0 }
  0xeb   : > { %v1316_v12 = vpack.c.bf16 %v287_v11, %v287_v11  ;;  %v1353_v13 = vpop.f32.mrb[2].mxu1  ;;  %v1322_v19 = vpack.c.bf16 %v450_v17, %v450_v17  ;;  %v1365_v20 = vpop.f32.mrb[2].mxu0 }
  0xec   : > { %318 = vst.msk [vmem:[#allocation2 + $0x8] sm:$0x7] %vm317_vm2, %v1318_v10  ;;  %v290_v15 = vpop.f32.mrb[3].mxu1  ;;  %v482_v21 = vrot.slane %v1324_v16, 6  ;;  %v453_v22 = vpop.f32.mrb[3].mxu0  ;;  %vm564_vm2 = vmor %vm562_vm15, %vm563_vm0 }
  0xed   : > { %315 = vst.msk [vmem:[#allocation2] sm:$0xf] %vm314_vm3, %v1316_v12  ;;  %v1317_v18 = vpack.c.bf16 %v290_v15, %v290_v15  ;;  %v477_v23 = vrot.slane %v1322_v19, 6  ;;  %v1323_v24 = vpack.c.bf16 %v453_v22, %v453_v22 }
  0xee   : > { %v484_v25 = vrot.slane %v482_v21, 4 }
  0xef   : > { %316 = vst.msk [vmem:[#allocation2 + $0x4] sm:$0xf] %vm314_vm3, %v1317_v18  ;;  %v478_v28 = vrot.slane %v477_v23, 4  ;;  %v479_v29 = vrot.slane %v1323_v24, 6 }
  0xf0   : > { %490 = vst.msk [vmem:[#allocation2 + $0x14] sm:$0xc] %vm489_vm6, %v477_v23 }
  0xf1   : > { %v1358_v27 = vpop.f32.mrb[4].mxu1  ;;  %494 = vst.msk [vmem:[#allocation2 + $0x20] sm:$0x1] %vm493_vm7, %v484_v25  ;;  %v480_v34 = vsel %vm1525_vm8, %v478_v28, %v479_v29  ;;  %v481_v35 = vrot.slane %v479_v29, 4 }
  0xf2   : > { %v1321_v30 = vpack.c.bf16 %v1358_v27, %v1358_v27  ;;  %v362_v31 = vpop.f32.mrb[5].mxu1  ;;  %491 = vst.msk [vmem:[#allocation2 + $0x18] sm:$0xf] %vm314_vm3, %v480_v34 }
  0xf3   : > { %v1319_v32 = vpack.c.bf16 %v362_v31, %v362_v31  ;;  %v1359_v33 = vpop.f32.mrb[6].mxu1  ;;  %v483_v40 = vsel %vm1525_vm8, %v481_v35, %v482_v21 }
  0xf4   : > { %v394_v36 = vrot.slane %v1321_v30, 5  ;;  %v365_v37 = vpop.f32.mrb[7].mxu1  ;;  %492 = vst.msk [vmem:[#allocation2 + $0x1c] sm:$0xf] %vm314_vm3, %v483_v40 }
  0xf5   : > { %v389_v38 = vrot.slane %v1319_v32, 5  ;;  %v1320_v39 = vpack.c.bf16 %v365_v37, %v365_v37 }
  0xf6   : > { %v396_v41 = vrot.slane %v394_v36, 4  ;;  %v1421_v42 = vld [vmem:[#allocation2] sm:$0xff]  }
  0xf7   : > { %v390_v43 = vrot.slane %v389_v38, 4  ;;  %402 = vst.msk [vmem:[#allocation2 + $0x8] sm:$0x8] %vm401_vm12, %v389_v38  ;;  %v391_v44 = vrot.slane %v1320_v39, 5  ;;  %1376 = vmatprep.mubr.msk.bf16.mxu0 %vm630_vm13, %v1421_v42 }
  0xf8   : > { %406 = vst.msk [vmem:[#allocation2 + $0x14] sm:$0x3] %vm405_vm11, %v396_v41 }
  0xf9   : > { %v392_v45 = vsel %vm388_vm14, %v390_v43, %v391_v44  ;;  %v393_v46 = vrot.slane %v391_v44, 4  ;;  %v1370_v47 = vpop.f32.mrb[8].mxu1 }
  0xfa   : > { %403 = vst.msk [vmem:[#allocation2 + $0xc] sm:$0xf] %vm314_vm3, %v392_v45  ;;  %v538_v48 = vpop.f32.mrb[9].mxu1  ;;  %v1327_v50 = vpack.c.bf16 %v1370_v47, %v1370_v47 }
  0xfb   : > { %v395_v49 = vsel %vm388_vm14, %v393_v46, %v394_v36  ;;  %v1325_v51 = vpack.c.bf16 %v538_v48, %v538_v48  ;;  %v1371_v52 = vpop.f32.mrb[10].mxu1  ;;  %v1426_v0 = vld [vmem:[#allocation2 + $0x18] sm:$0xff]  }
  0xfc   : > { %404 = vst.msk [vmem:[#allocation2 + $0x10] sm:$0xf] %vm314_vm3, %v395_v49  ;;  %v541_v53 = vpop.f32.mrb[11].mxu1  ;;  %v570_v56 = vrot.slane %v1327_v50, 7 }
  0xfd   : > { %v565_v54 = vrot.slane %v1325_v51, 7  ;;  %v1326_v55 = vpack.c.bf16 %v541_v53, %v541_v53 }
  0xff   : > { %v566_v57 = vrot.slane %v565_v54, 4  ;;  %576 = vst.msk [vmem:[#allocation2 + $0x20] sm:$0xe] %vm575_vm1, %v565_v54  ;;  %v567_v58 = vrot.slane %v1326_v55, 7 }
 0x101   : > { %v568_v59 = vsel %vm564_vm2, %v566_v57, %v567_v58  ;;  %v569_v60 = vrot.slane %v567_v58, 4  ;;  %v1424_v61 = vld [vmem:[#allocation2 + $0x8] sm:$0xff]  }
 0x102   : > { %577 = vst.msk [vmem:[#allocation2 + $0x24] sm:$0xf] %vm314_vm3, %v568_v59  ;;  %1377 = vmatmul.mubr.msk.bf16.vlgmr.msra.gmra.mrb[4].mxu0 %vm630_vm13, %v1424_v61 }
 0x103   : > { %v571_v62 = vsel %vm564_vm2, %v569_v60, %v570_v56  ;;  %v1425_v63 = vld [vmem:[#allocation2 + $0x10] sm:$0xff]  }
 0x104   : > { %578 = vst.msk [vmem:[#allocation2 + $0x28] sm:$0xf] %vm314_vm3, %v571_v62  ;;  %1380 = vmatprep.mubr.msk.bf16.mxu0 %vm630_vm13, %v1425_v63  ;;  %vm1146_vm3 = vcmask 267264  }
 0x109   : > { %v1427_v1 = vld [vmem:[#allocation2 + $0x20] sm:$0xff]  }
 0x10a   : > { %1381 = vmatmul.mubr.msk.bf16.gmra.mrb[8].mxu0 %vm630_vm13, %v1426_v0 }
 0x10b   : > { %1384 = vmatprep.mubr.msk.bf16.mxu0 %vm630_vm13, %v1427_v1  ;;  %v1428_v2 = vld [vmem:[#allocation2 + $0x28] ss:$0 sps:$4 sm:$0xff]  }
 0x112   : > { %1385 = vmatmul.mubr.msk.bf16.gmra.mrb[12].mxu0 %vm630_vm13, %v1428_v2 }
 0x1d5   : > { %v1378_v9 = vpop.f32.mrb[4].mxu0 }
 0x1d6   : > { %v778_v10 = vcombine.high %v1378_v9, %v1378_v9  ;;  %v785_v11 = vrot.slane %v1378_v9, %v1546_v8  ;;  %v687_v12 = vpop.f32.mrb[5].mxu0 }
 0x1d7   : > { %v744_v13 = vcombine.high %v687_v12, %v687_v12  ;;  %v751_v14 = vrot.slane %v687_v12, %v1546_v8  ;;  %v1379_v15 = vpop.f32.mrb[6].mxu0 }
 0x1d8   : > { %v792_v16 = vrot.slane %v778_v10, %v1546_v8  ;;  %v793_v17 = vcombine.high %v785_v11, %v785_v11  ;;  %v795_v18 = vcombine.high %v1379_v15, %v1379_v15  ;;  %v802_v19 = vrot.slane %v1379_v15, %v1546_v8  ;;  %v690_v20 = vpop.f32.mrb[7].mxu0 }
 0x1d9   : > { %v758_v21 = vrot.slane %v744_v13, %v1546_v8  ;;  %v759_v22 = vcombine.high %v751_v14, %v751_v14  ;;  %v761_v23 = vcombine.high %v690_v20, %v690_v20  ;;  %v768_v24 = vrot.slane %v690_v20, %v1546_v8 }
 0x1da   : > { %v965_v25 = vcombine.low %v785_v11, %v793_v17  ;;  %v979_v26 = vrot.slane %v792_v16, %v1546_v8  ;;  %v794_v27 = vcombine.high %v792_v16, %v792_v16  ;;  %v809_v28 = vrot.slane %v795_v18, %v1546_v8 }
 0x1db   : > { %v760_v29 = vcombine.high %v758_v21, %v758_v21  ;;  %v931_v30 = vcombine.low %v751_v14, %v759_v22  ;;  %v810_v31 = vcombine.high %v802_v19, %v802_v19  ;;  %v775_v32 = vrot.slane %v761_v23, %v1546_v8 }
 0x1dc   : > { %v972_v33 = vrot.slane %v965_v25, %v1546_v8  ;;  %v981_v34 = vcombine.low %v794_v27, %v802_v19  ;;  %v776_v35 = vcombine.high %v768_v24, %v768_v24  ;;  %v811_v36 = vcombine.high %v809_v28, %v809_v28 }
 0x1dd   : > { %v932_v37 = vcombine.low %v758_v21, %v760_v29  ;;  %v939_v38 = vrot.slane %v931_v30, %v1546_v8  ;;  %v982_v39 = vcombine.low %v810_v31, %v809_v28  ;;  %v777_v40 = vcombine.high %v775_v32, %v775_v32  ;;  %v1382_v41 = vpop.f32.mrb[8].mxu0 }
 0x1de   : > { %v980_v42 = vcombine.low %v972_v33, %v979_v26  ;;  %v989_v43 = vrot.slane %v981_v34, %v1546_v8  ;;  %v948_v44 = vcombine.low %v768_v24, %v776_v35  ;;  %v846_v45 = vcombine.high %v1382_v41, %v1382_v41  ;;  %v703_v46 = vpop.f32.mrb[9].mxu0 }
 0x1df   : > { %v946_v47 = vrot.slane %v932_v37, %v1546_v8  ;;  %v996_v48 = vrot.slane %v982_v39, %v1546_v8  ;;  %v949_v49 = vcombine.low %v775_v32, %v777_v40  ;;  %v853_v50 = vrot.slane %v1382_v41, %v1546_v8  ;;  %v1383_v51 = vpop.f32.mrb[10].mxu0 }
 0x1e0   : > { %1147 = vst.msk [vmem:[%s1562_s8 + $0x10] sm:$0x3f] %vm1146_vm3, %v980_v42  ;;  %v956_v52 = vrot.slane %v948_v44, %v1546_v8  ;;  %v860_v53 = vrot.slane %v846_v45, %v1546_v8  ;;  %v812_v54 = vcombine.high %v703_v46, %v703_v46  ;;  %v819_v55 = vrot.slane %v703_v46, %v1546_v8  ;;  %v706_v56 = vpop.f32.mrb[11].mxu0 }
 0x1e1   : > { %v947_v57 = vcombine.low %v939_v38, %v946_v47  ;;  %v997_v58 = vcombine.low %v989_v43, %v996_v48  ;;  %v963_v59 = vrot.slane %v949_v49, %v1546_v8  ;;  %v861_v60 = vcombine.high %v853_v50, %v853_v50 }
 0x1e2   : > { %v862_v61 = vcombine.high %v860_v53, %v860_v53  ;;  %v826_v62 = vrot.slane %v812_v54, %v1546_v8  ;;  %v827_v63 = vcombine.high %v819_v55, %v819_v55  ;;  %v998_v0 = vcombine.low %v811_v36, %v819_v55 }
 0x1e3   : > { %1144 = vst.msk [vmem:[%s1562_s8] sm:$0xff] %vm1143_vm4, %v947_v57  ;;  %v964_v1 = vcombine.low %v956_v52, %v963_v59  ;;  %v1032_v2 = vcombine.low %v853_v50, %v861_v60  ;;  %v863_v3 = vcombine.high %v1383_v51, %v1383_v51  ;;  %v870_v4 = vrot.slane %v1383_v51, %v1546_v8 }
 0x1e4   : > { %1148 = vst.msk [vmem:[%s1562_s8 + $0x18] sm:$0xff] %vm1143_vm4, %v997_v58  ;;  %v1048_v5 = vcombine.low %v860_v53, %v862_v61  ;;  %v999_v6 = vcombine.low %v827_v63, %v826_v62  ;;  %v1006_v7 = vrot.slane %v998_v0, %v1546_v8  ;;  %v828_v9 = vcombine.high %v826_v62, %v826_v62 }
 0x1e5   : > { %1145 = vst.msk [vmem:[%s1562_s8 + $0x8] sm:$0xff] %vm1143_vm4, %v964_v1  ;;  %v1046_v10 = vrot.slane %v1032_v2, %v1546_v8  ;;  %v877_v11 = vrot.slane %v863_v3, %v1546_v8  ;;  %v878_v12 = vcombine.high %v870_v4, %v870_v4  ;;  %v829_v13 = vcombine.high %v706_v56, %v706_v56  ;;  %v1386_v14 = vpop.f32.mrb[12].mxu0 }
 0x1e6   : > { %v1056_v15 = vrot.slane %v1048_v5, %v1546_v8  ;;  %v1013_v16 = vrot.slane %v999_v6, %v1546_v8  ;;  %v836_v17 = vrot.slane %v706_v56, %v1546_v8  ;;  %v914_v18 = vcombine.high %v1386_v14, %v1386_v14  ;;  %v719_v19 = vpop.f32.mrb[13].mxu0 }
 0x1e7   : > { %v879_v20 = vcombine.high %v877_v11, %v877_v11  ;;  %v1049_v21 = vcombine.low %v870_v4, %v878_v12  ;;  %v843_v22 = vrot.slane %v829_v13, %v1546_v8  ;;  %v921_v23 = vrot.slane %v1386_v14, %v1546_v8  ;;  %v1387_v24 = vpop.f32.mrb[14].mxu0 }
 0x1e8   : > { %v1014_v25 = vcombine.low %v1006_v7, %v1013_v16  ;;  %v844_v26 = vcombine.high %v836_v17, %v836_v17  ;;  %v1015_v27 = vcombine.low %v828_v9, %v836_v17  ;;  %v928_v28 = vrot.slane %v914_v18, %v1546_v8  ;;  %v722_v29 = vpop.f32.mrb[15].mxu0 }
 0x1e9   : > { %v1063_v30 = vrot.slane %v1049_v21, %v1546_v8  ;;  %v1065_v31 = vcombine.low %v877_v11, %v879_v20  ;;  %v845_v32 = vcombine.high %v843_v22, %v843_v22  ;;  %v929_v33 = vcombine.high %v921_v23, %v921_v23 }
 0x1ea   : > { %1149 = vst.msk [vmem:[%s1562_s8 + $0x20] sm:$0xff] %vm1143_vm4, %v1014_v25  ;;  %v1022_v34 = vrot.slane %v1015_v27, %v1546_v8  ;;  %v1029_v35 = vrot.slane %v844_v26, %v1546_v8  ;;  %v930_v36 = vcombine.high %v928_v28, %v928_v28  ;;  %v880_v37 = vcombine.high %v719_v19, %v719_v19 }
 0x1eb   : > { %v1064_v38 = vcombine.low %v1056_v15, %v1063_v30  ;;  %v1031_v39 = vcombine.low %v843_v22, %v845_v32  ;;  %v1115_v40 = vcombine.low %v929_v33, %v928_v28  ;;  %v887_v41 = vrot.slane %v719_v19, %v1546_v8 }
 0x1ec   : > { %v1030_v42 = vcombine.low %v1022_v34, %v1029_v35  ;;  %v1129_v43 = vrot.slane %v930_v36, %v1546_v8  ;;  %v894_v44 = vrot.slane %v880_v37, %v1546_v8  ;;  %v1072_v45 = vrot.slane %v1065_v31, %v1546_v8 }
 0x1ed   : > { %1152 = vst.msk [vmem:[%s1562_s8 + $0x38] sm:$0xff] %vm1143_vm4, %v1064_v38  ;;  %v1039_v46 = vrot.slane %v1031_v39, %v1546_v8  ;;  %v1122_v47 = vrot.slane %v1115_v40, %v1546_v8  ;;  %v895_v48 = vcombine.high %v887_v41, %v887_v41  ;;  %v1079_v49 = vrot.slane %v887_v41, %v1546_v8 }
 0x1ee   : > { %1150 = vst.msk [vmem:[%s1562_s8 + $0x28] sm:$0x3f] %vm1146_vm3, %v1030_v42  ;;  %v896_v50 = vcombine.high %v894_v44, %v894_v44  ;;  %v897_v51 = vcombine.high %v722_v29, %v722_v29  ;;  %v904_v52 = vrot.slane %v722_v29, %v1546_v8 }
 0x1ef   : > { %v1047_v53 = vcombine.low %v1039_v46, %v1046_v10  ;;  %v1130_v54 = vcombine.low %v1122_v47, %v1129_v43  ;;  %v1080_v55 = vcombine.low %v1072_v45, %v1079_v49  ;;  %v1081_v56 = vcombine.low %v895_v48, %v894_v44 }
 0x1f0   : > { %v911_v57 = vrot.slane %v897_v51, %v1546_v8  ;;  %v912_v58 = vcombine.high %v904_v52, %v904_v52  ;;  %v1082_v59 = vcombine.low %v896_v50, %v904_v52 }
 0x1f1   : > { %1151 = vst.msk [vmem:[%s1562_s8 + $0x30] sm:$0xff] %vm1143_vm4, %v1047_v53  ;;  %v1089_v60 = vrot.slane %v1081_v56, %v1546_v8 }
 0x1f2   : > { %1153 = vst.msk [vmem:[%s1562_s8 + $0x40] sm:$0x3f] %vm1146_vm3, %v1080_v55  ;;  %1156 = vst.msk [vmem:[%s1562_s8 + $0x58] sm:$0x3f] %vm1146_vm3, %v1130_v54  ;;  %v913_v61 = vcombine.high %v911_v57, %v911_v57  ;;  %v1096_v62 = vrot.slane %v1082_v59, %v1546_v8  ;;  %v1098_v63 = vcombine.low %v912_v58, %v911_v57 }
 0x1f4   : > { %v1097_v0 = vcombine.low %v1089_v60, %v1096_v62  ;;  %v1099_v1 = vcombine.low %v913_v61, %v921_v23  ;;  %v1106_v2 = vrot.slane %v1098_v63, %v1546_v8 }
 0x1f6   : > { %v1113_v3 = vrot.slane %v1099_v1, %v1546_v8  ;;  %1154 = vst.msk [vmem:[%s1562_s8 + $0x48] sm:$0xff] %vm1143_vm4, %v1097_v0 }
 0x1f8   : > { %v1114_v4 = vcombine.low %v1106_v2, %v1113_v3 }
 0x1fa   : > { %1155 = vst.msk [vmem:[%s1562_s8 + $0x50] sm:$0xff] %vm1143_vm4, %v1114_v4 }
 0x1fb PF: > { %s15_s17 = sadd.s32 1, %s1451_s17   ;;  %s1640_s15 = smov %s1447_s16 }
 0x1fc   : > { %p12_p5 = scmp.ge.s32.totalorder %s15_s17, 4   ;;  %s1641_s16 = smov %s1643_s0 }
 0x1fe   :  { %14 = sbr.rel (!%p12_p5) target bundleno = 2 (0x2), region = 68 }

</bundles_post_ra>
